<compile_context>
chip_gen: v5e
topology: v5e:2x2
jax: 0.10.0
libtpu: 0.0.40
codegen_flags: <defaults>
</compile_context>

<pallas_src>
import functools

import jax
import jax.numpy as jnp
from jax.experimental import pallas as pl
from jax.experimental.pallas import tpu as pltpu


def _round_up(x: int, m: int) -> int:
    return ((x + m - 1) // m) * m


def _choose_flat_shape(n_elems: int, max_lanes: int = 64 * 1024):
    """Largest cols (multiple of 128) with n_elems % cols == 0 and rows % 8 == 0."""
    best = None
    cols = 128
    limit = min(n_elems, max_lanes)
    while cols <= limit:
        if n_elems % cols == 0 and (n_elems // cols) % 8 == 0:
            best = cols
        cols += 128
    if best is None:
        return None
    return (n_elems // best, best)


def server_fcf_update(item_factor: jax.Array, grad: jax.Array, lr,
                      *, block_bytes: int = 4 << 20) -> jax.Array:
    """Pallas implementation of ServerFCFModel.update(): factor - lr * grad."""
    F, I = item_factor.shape
    assert grad.shape == (F, I), (grad.shape, (F, I))
    dtype = item_factor.dtype
    grad = grad.astype(dtype)                       # one dtype/layout for both streams
    lr_arr = jnp.asarray(lr, dtype=jnp.float32).reshape(1, 1)
    bpe = dtype.itemsize

    # --- lane-dense 2-D view -------------------------------------------------
    # Low / odd feature counts waste sublanes and force strided per-row DMA;
    # flatten row-major to an (8k, 128m) slab when an exact factorization exists.
    R, C = F, I
    flattened = False
    if F < 8 or F % 8 != 0:
        flat = _choose_flat_shape(F * I)
        if flat is not None:
            R, C = flat
            item_factor = item_factor.reshape(R, C)
            grad = grad.reshape(R, C)
            flattened = True

    # --- tile selection ------------------------------------------------------
    if R * 128 * bpe <= block_bytes:
        tile_r = R                                  # full extent (always legal)
    else:
        tile_r = 256                                # large-R fallback, 8-aligned

    lanes_budget = max(1, block_bytes // (tile_r * bpe * 128)) * 128
    if C < 2 * 128:
        tile_c = C                                  # too narrow to split; full extent
    else:
        # >= 2 balanced, 128-aligned stripes so both v7x TCs stream and the
        # masked tail stripe is never nearly empty.
        n_stripes = max(2, pl.cdiv(C, lanes_budget))
        tile_c = min(_round_up(pl.cdiv(C, n_stripes), 128), _round_up(C, 128))

    grid = (pl.cdiv(R, tile_r), pl.cdiv(C, tile_c))

    # VMEM budget tracks the real pipelined footprint:
    # 3 arrays x 2 pipeline buffers per block + slack; safe under v7x's 64 MiB.
    block_vmem = tile_r * tile_c * bpe
    vmem_limit = min(max(6 * block_vmem + (4 << 20), 32 << 20), 96 << 20)

    def _sgd_update_kernel(lr_ref, factor_ref, grad_ref, out_ref):
        lr_f32 = lr_ref[0, 0]
        f = factor_ref[...].astype(jnp.float32)
        g = grad_ref[...].astype(jnp.float32)
        out_ref[...] = (f - lr_f32 * g).astype(out_ref.dtype)

    out = pl.pallas_call(
        _sgd_update_kernel,
        out_shape=jax.ShapeDtypeStruct((R, C), dtype),
        grid=grid,
        in_specs=[
            pl.BlockSpec(memory_space=pltpu.MemorySpace.SMEM),      # lr scalar
            pl.BlockSpec((tile_r, tile_c), lambda i, j: (i, j)),    # item_factor
            pl.BlockSpec((tile_r, tile_c), lambda i, j: (i, j)),    # grad
        ],
        out_specs=pl.BlockSpec((tile_r, tile_c), lambda i, j: (i, j)),
        input_output_aliases={1: 0},      # in-place HBM update of item_factor
        cost_estimate=pl.CostEstimate(
            flops=2 * R * C, transcendentals=0, bytes_accessed=3 * R * C * bpe),
        compiler_params=pltpu.CompilerParams(
            dimension_semantics=("parallel", "parallel"),
            vmem_limit_bytes=vmem_limit),
    )(lr_arr, item_factor, grad)

    if flattened:
        out = out.reshape(F, I)
    return out


@functools.partial(jax.jit, donate_argnums=(0,))
def _jitted_update(item_factor: jax.Array, grad: jax.Array, lr: jax.Array):
    return server_fcf_update(item_factor, grad, lr)


class ServerFCFModel:
    """JAX/Pallas port of the PyTorch ServerFCFModel."""

    def __init__(self, srv_lr: float, item_num: int, features: int, key=None):
        self.lr = float(srv_lr)
        self.features = features
        if key is None:
            key = jax.random.PRNGKey(0)
        # nn.init.normal_(torch.empty(features, item_num), std=0.35)
        self.item_factor = 0.35 * jax.random.normal(
            key, (features, item_num), dtype=jnp.float32)

    def update(self, grad: jax.Array):
        # item_factor is donated + aliased to the kernel output (in-place HBM
        # update); do not read the old array after this call.
        self.item_factor = _jitted_update(
            self.item_factor, jnp.asarray(grad), jnp.float32(self.lr))

    def get_item_factor(self) -> jax.Array:
        return jax.lax.stop_gradient(self.item_factor)

    def forward(self):
        # TODO(synk): PyTorch forward() is `pass` (no computation); nothing to lower.
        return None


if __name__ == "__main__":
    key = jax.random.PRNGKey(0)
    k_init, k_grad, k_init2, k_grad2 = jax.random.split(key, 4)

    # Case 1: sublane-aligned features -> direct (F, I) tiling path.
    features, item_num, srv_lr = 32, 256, 0.05
    model = ServerFCFModel(srv_lr, item_num, features, key=k_init)
    grad = jax.random.normal(k_grad, (features, item_num), dtype=jnp.float32)
    # Reference BEFORE update(): the old buffer is donated to the kernel.
    expected = jax.block_until_ready(model.item_factor - srv_lr * grad)
    model.update(grad)
    after = jax.block_until_ready(model.item_factor)
    assert after.shape == (features, item_num)
    assert jnp.allclose(after, expected, atol=1e-6), "case 1: mismatch vs reference"

    # Case 2: small feature count (< 8) -> exercises the flattened lane-major path.
    features2, item_num2, srv_lr2 = 4, 512, 0.01
    model2 = ServerFCFModel(srv_lr2, item_num2, features2, key=k_init2)
    grad2 = jax.random.normal(k_grad2, (features2, item_num2), dtype=jnp.float32)
    expected2 = jax.block_until_ready(model2.item_factor - srv_lr2 * grad2)
    model2.update(grad2)
    after2 = jax.block_until_ready(model2.item_factor)
    assert after2.shape == (features2, item_num2)
    assert jnp.allclose(after2, expected2, atol=1e-6), "case 2: mismatch vs reference"

    print("KERNEL_OK")
</pallas_src>

<mosaic_0001>
module attributes {stable_mosaic.version = 11 : i64} {
  func.func @_sgd_update_kernel(%arg0: i32, %arg1: i32, %arg2: memref<1x1xf32, #tpu.memory_space<smem>>, %arg3: memref<32x128xf32, #tpu.memory_space<vmem>>, %arg4: memref<32x128xf32, #tpu.memory_space<vmem>>, %arg5: memref<32x128xf32, #tpu.memory_space<vmem>>) attributes {dimension_semantics = [#tpu.dimension_semantics<parallel>, #tpu.dimension_semantics<parallel>], iteration_bounds = array<i64: 1, 2>, scalar_prefetch = 0 : i64, scratch_operands = 0 : i64, tpu.core_type = #tpu.core_type<tc>, window_params = [{transform_indices = @transform_0, window_bounds = array<i64: 1, 1>}, {transform_indices = @transform_1, window_bounds = array<i64: 32, 128>}, {transform_indices = @transform_2, window_bounds = array<i64: 32, 128>}, {transform_indices = @transform_3, window_bounds = array<i64: 32, 128>}]} {
    %c0 = arith.constant 0 : index
    %c0_0 = arith.constant 0 : index
    %0 = memref.load %arg2[%c0, %c0_0] : memref<1x1xf32, #tpu.memory_space<smem>>
    %c0_1 = arith.constant 0 : index
    %c0_2 = arith.constant 0 : index
    %1 = vector.load %arg3[%c0_1, %c0_2] : memref<32x128xf32, #tpu.memory_space<vmem>>, vector<32x128xf32>
    %c0_3 = arith.constant 0 : index
    %c0_4 = arith.constant 0 : index
    %2 = vector.load %arg4[%c0_3, %c0_4] : memref<32x128xf32, #tpu.memory_space<vmem>>, vector<32x128xf32>
    %3 = vector.broadcast %0 : f32 to vector<32x128xf32>
    %4 = arith.mulf %3, %2 : vector<32x128xf32>
    %5 = arith.subf %1, %4 : vector<32x128xf32>
    %c0_5 = arith.constant 0 : index
    %c0_6 = arith.constant 0 : index
    %6 = vector.load %arg5[%c0_5, %c0_6] : memref<32x128xf32, #tpu.memory_space<vmem>>, vector<32x128xf32>
    tpu.vector_store %arg5[%c0_5, %c0_6], %5 {strides = array<i32>} : memref<32x128xf32, #tpu.memory_space<vmem>>, vector<32x128xf32>,
    return
  }
  func.func @transform_0(%arg0: i32, %arg1: i32) -> (i32, i32) {
    %c0_i32 = arith.constant 0 : i32
    %c0_i32_0 = arith.constant 0 : i32
    %c0_i32_1 = arith.constant 0 : i32
    return %c0_i32, %c0_i32_0 : i32, i32
  }
  func.func @transform_1(%arg0: i32, %arg1: i32) -> (i32, i32) {
    %c0_i32 = arith.constant 0 : i32
    return %arg0, %arg1 : i32, i32
  }
  func.func @transform_2(%arg0: i32, %arg1: i32) -> (i32, i32) {
    %c0_i32 = arith.constant 0 : i32
    return %arg0, %arg1 : i32, i32
  }
  func.func @transform_3(%arg0: i32, %arg1: i32) -> (i32, i32) {
    %c0_i32 = arith.constant 0 : i32
    return %arg0, %arg1 : i32, i32
  }
}

</mosaic_0001>

<bundles_post_ra>
// kernel: _jitted_update.1
= control target key start
LH: loop header
LB: loop body
LE: loop exit
PB: predicated region body
PF: predicated region fallthrough
CT: control target
= control target key end

     0   :  { %s819_s0 = inlined_call_operand.<no memory space> [shape: f32[1,1], index: 0, kind: input, shape index: {}]   ;;  %s820_s1 = inlined_call_operand.hbm [shape: f32[32,256], index: 1, kind: input, shape index: {}, may-alias: {1,3}]   ;;  %s821_s2 = inlined_call_operand.hbm [shape: f32[32,256], index: 2, kind: input, shape index: {}]   ;;  %s822_s3 = inlined_call_operand.hbm [shape: f32[32,256], index: 3, kind: output, shape index: {}, may-alias: {1,3}]  }
   0x1   :  { %823 = sst [smem:[#allocation12_spill]] %s820_s1 }
   0x2   :  { %8 = sst [smem:[#allocation2]] %s819_s0 }
   0x3   :  { %9 = vsyncpa [#allocation4], 0 }
   0x4   :  { %11 = vsyncpa [#allocation4 + $0x1], 0 }
   0x5   :  { %12 = vsyncpa [#allocation7], 0 }
   0x6   :  { %14 = vsyncpa [#allocation7 + $0x1], 0 }
   0x7   :  { %15 = vsyncpa [#allocation5], 0 }
   0x8   :  { %17 = vsyncpa [#allocation5 + $0x1], 0  ;;  %s675_s14 = smov 0   ;;  %s677_s15 = smov 0  }
   0x9   :  { %s679_s16 = smov 0   ;;  %s681_s17 = smov 0  }
   0xa   :  { %s683_s18 = smov 0   ;;  %s685_s19 = smov 0  }
   0xb LB: > { %s409_s0 = sadd.s32 4294967295, %s644_s19   ;;  %s410_s20 = sadd.s32 4294967294, %s644_s19   ;;  %s644_s19 = sphi %s685_s19, %s23_s19   ;;  %s640_s18 = sphi %s683_s18, %s834_s18   ;;  %s636_s17 = sphi %s681_s17, %s833_s17   ;;  %s632_s16 = sphi %s679_s16, %s832_s16   ;;  %s628_s15 = sphi %s677_s15, %s831_s15   ;;  %s624_s14 = sphi %s675_s14, %s830_s14  }
   0xc   : > { %s32_s21 = sadd.s32 1, %s640_s18  ;;  %s65_s22 = sadd.s32 1, %s632_s16 }
   0xd   : > { %p33_p0 = scmp.ge.s32.totalorder %s32_s21, 2  ;;  %p72_p1 = scmp.ne.s32.totalorder %s632_s16, %s628_s15 }
   0xe   : > { %p73_p2 = scmp.eq.s32.totalorder %s644_s19, 0  ;;  %p78_p3 = scmp.ne.s32.totalorder %s628_s15, %s624_s14 }
   0xf   : > { %s836_s21 = smov (%p33_p0, %s32_s21), 0  ;;  %p79_p5 = scmp.eq.s32.totalorder %s409_s0, 0 }
  0x10   : > { %p716_p4 = por %p73_p2, %p72_p1  ;;  %s61_s24 = ssub.s32 %s640_s18, %s836_s21 }
  0x11   : > { %p132_p6 = scmp.eq.s32.totalorder %s409_s0, 1  ;;  %p63_p7 = scmp.eq.s32.totalorder %s61_s24, 0 }
  0x12   : > { %p722_p8 = por %p79_p5, %p78_p3  ;;  %p138_p10 = scmp.eq.s32.totalorder %s410_s20, 1 }
  0x13   : > { %p726_p9 = por %p132_p6, %p72_p1  ;;  %p412_p12 = scmp.ge.s32.totalorder %s644_s19, 2 }
  0x14   : > { %s731_s27 = scalar_select %p63_p7, %s632_s16, %s65_s22  }
  0x15   : > { %p733_p11 = por %p138_p10, %p78_p3  ;;  %p442_p13 = scmp.lt.s32.totalorder %s644_s19, 2 }
  0x16   : > { %s740_s29 = sand.u32 1, %s632_s16   ;;  %s414_s4 = sshll.u32 %s640_s18, 3 }
  0x17   : > { %s413_s30 = sshll.u32 %s740_s29, 5  ;;  %s828_s1 = sld [smem:[#allocation12_spill]] }
  0x18   : > { %s165_s8 = scalar_lea.vmem [#allocation3], %s413_s30  ;;  %p749_p0 = pnand %p442_p13, %p716_p4 }
  0x19   : > { %s175_s9 = sshll.u32 %s165_s8, 4  ;;  %s162_s12 = scalar_lea.sflag [#allocation4], %s740_s29  ;;  %s176_s9 = int_to_ptr.vmem [resolvable:$true] %s175_s9 }
  0x1a   : > { %s646_s13 = smov 256   ;;  %s647_s0 = smov 128  }
  0x1b   : > { %s648_s20 = smov 8   ;;  %p417_p1 = scmp.ge.s32.totalorder %s644_s19, 1 }
  0x1c   : > { %p207_p2 = scmp.lt.s32.totalorder %s644_s19, 3  ;;  %s196_s23 = scalar_lea.hbm %s821_s2, %s414_s4 }
  0x1d   : > { %s172_s7 = scalar_lea.hbm %s828_s1, %s414_s4  ;;  %s197_s5 = sshll.u32 %s196_s23, 4  ;;  %s198_s5 = int_to_ptr.hbm [resolvable:$true] %s197_s5 }
  0x1e   : > { %s173_s10 = sshll.u32 %s172_s7, 4  ;;  %p208_p3 = pnand %p417_p1, %p207_p2  ;;  %s174_s10 = int_to_ptr.hbm [resolvable:$true] %s173_s10 }
  0x1f   : > { %434 = dma.hbm_to_vmem [thread:$0]  (!%p749_p0), %s174_s10, 512, %s176_s9, %s162_s12, %s646_s13, %s647_s0, %s648_s20  }
  0x20   : > { %s189_s6 = scalar_lea.vmem [#allocation6], %s413_s30  ;;  %s186_s8 = scalar_lea.sflag [#allocation7], %s740_s29 }
  0x21   : > { %s199_s7 = sshll.u32 %s189_s6, 4  ;;  %211 = sbr.rel (%p208_p3) target bundleno = 60 (0x3c), region = 32  ;;  %s200_s7 = int_to_ptr.vmem [resolvable:$true] %s199_s7 }
  0x22   : > { %437 = dma.hbm_to_vmem [thread:$0]  (!%p749_p0), %s198_s5, 512, %s200_s7, %s186_s8, %s646_s13, %s647_s0, %s648_s20  }
  0x23   : > { %s765_s1 = sand.u32 (!%p208_p3), 1, %s628_s15  }
  0x24   : > { %s418_s9 = sshll.u32 (!%p208_p3), %s765_s1, 5  ;;  %s214_s10 = scalar_lea.sflag (!%p208_p3), [#allocation4], %s765_s1 }
  0x25   : > { %s217_s12 = scalar_lea.vmem (!%p208_p3), [#allocation3], %s418_s9 }
  0x26   : > { %611 = dma.done.wait (%p722_p8), %s214_s10, 512  }
  0x27   : > { %613 = vsyncadd (%p722_p8), %s214_s10, 4294966784  ;;  %s224_s29 = scalar_lea.sflag [#allocation7], %s765_s1  ;;  %s227_s30 = scalar_lea.vmem [#allocation6], %s418_s9 }
  0x28   : > { %615 = dma.done.wait (%p722_p8), %s224_s29, 512  }
  0x29   : > { %617 = vsyncadd (%p722_p8), %s224_s29, 4294966784  ;;  %s259_s4 = sld [smem:[#allocation2]]  ;;  %s422_s11 = sshll.u32 %s636_s17, 3  ;;  %v260_v0 = vld [vmem:[%s217_s12] sm:$0xff]  ;;  %v261_v3 = vld [vmem:[%s217_s12 + $0x8] sm:$0xff] }
  0x2a   : > { %v264_v1 = vld [vmem:[%s227_s30] sm:$0xff]  ;;  %s295_s20 = scalar_lea.hbm %s822_s3, %s422_s11  ;;  %s255_s22 = scalar_lea.vmem [#allocation8], %s418_s9  ;;  %v265_v5 = vld [vmem:[%s227_s30 + $0x8] sm:$0xff]  ;;  %v262_v6 = vld [vmem:[%s217_s12 + $0x10] sm:$0xff] }
  0x2b   : > { %s296_s24 = sshll.u32 %s255_s22, 4  ;;  %v266_v7 = vld [vmem:[%s227_s30 + $0x10] sm:$0xff]  ;;  %v263_v10 = vld [vmem:[%s217_s12 + $0x18] sm:$0xff]  ;;  %s298_s17 = sshll.u32 %s295_s20, 4  ;;  %s782_s24 = int_to_ptr.vmem [resolvable:$true] %s296_s24  ;;  %s299_s17 = int_to_ptr.hbm [resolvable:$true] %s298_s17 }
  0x2c   : > { %v267_v11 = vld [vmem:[%s227_s30 + $0x18] sm:$0xff]  ;;  %s282_s25 = scalar_lea.sflag [#allocation5], %s765_s1  ;;  %s572_s23 = sshra.s32 %s299_s17, 4  ;;  %s573_s23 = int_to_ptr.hbm [resolvable:$true] %s572_s23 }
  0x2d   : > { %s574_s5 = scalar_lea.hbm %s573_s23, 32  ;;  %s578_s8 = scalar_lea.hbm %s822_s3, 64 }
  0x2e   : > { %p575_p4 = scmp.ne.s32.totalorder %s573_s23, %s574_s5  ;;  %p579_p7 = scmp.lt.s32.totalorder %s573_s23, %s822_s3 }
  0x2f   : > { %v268_v2 = vstv %s259_s4  ;;  %p580_p8 = scmp.lt.s32.totalorder %s578_s8, %s574_s5 }
  0x30   : > { %v269_v4 = vmul.f32 %v268_v2, %v264_v1  ;;  %v270_v8 = vmul.f32 %v268_v2, %v265_v5  ;;  %v271_v9 = vmul.f32 %v268_v2, %v266_v7  ;;  %v272_v13 = vmul.f32 %v268_v2, %v267_v11  ;;  %p576_p5 = pnand %p575_p4, %p726_p9 }
  0x31   : > { %p581_p10 = por %p580_p8, %p579_p7 }
  0x32   : > { %v273_v12 = vsub.f32 %v260_v0, %v269_v4  ;;  %v274_v14 = vsub.f32 %v261_v3, %v270_v8  ;;  %v275_v15 = vsub.f32 %v262_v6, %v271_v9  ;;  %v276_v16 = vsub.f32 %v263_v10, %v272_v13  ;;  %p577_p6 = pneg %p576_p5 }
  0x34   : > { %277 = vst [vmem:[%s255_s22] sm:$0xff] %v273_v12  ;;  %p582_p13 = pnand %p581_p10, %p577_p6 }
  0x35   : > { %278 = vst [vmem:[%s255_s22 + $0x8] sm:$0xff] %v274_v14 }
  0x36   : > { %279 = vst [vmem:[%s255_s22 + $0x10] sm:$0xff] %v275_v15 }
  0x37   : > { %280 = vst [vmem:[%s255_s22 + $0x18] sm:$0xff] %v276_v16 }
  0x38   : > { %585 = shalt.err (!%p582_p13)
}
  0x39   : > { %s649_s1 = smov 128   ;;  %s650_s12 = smov 256  }
  0x3a   : > { %s651_s29 = smov 8  }
  0x3b   : > { %429 = dma.vmem_to_hbm [thread:$0]  (%p726_p9), %s782_s24, 512, %s299_s17, %s282_s25, %s649_s1, %s650_s12, %s651_s29  }
  0x3c PF: > { %s313_s30 = sand.u32 1, %s624_s14   ;;  %p439_p0 = pnand %p412_p12, %p733_p11 }
  0x3d   : > { %s314_s4 = scalar_lea.sflag [#allocation5], %s313_s30 }
  0x3e   : > { %p440_p1 = pneg %p439_p0 }
  0x40   : > { %619 = dma.done.wait (%p440_p1), %s314_s4, 512  }
  0x41   : > { %621 = vsyncadd (%p440_p1), %s314_s4, 4294966784  ;;  %s23_s19 = sadd.s32 1, %s644_s19   ;;  %s830_s14 = smov %s628_s15 }
  0x42   : > { %p20_p2 = scmp.ge.s32.totalorder %s23_s19, 4   ;;  %s831_s15 = smov %s632_s16 }
  0x43   : > { %s832_s16 = smov %s731_s27  ;;  %s833_s17 = smov %s640_s18 }
  0x44   : > { %s834_s18 = smov %s836_s21  ;;  %22 = sbr.rel (!%p20_p2) target bundleno = 11 (0xb), region = 90 }
  0x49   :  { %320 = vsyncpa [#allocation4], 1 }
  0x4a   :  { %322 = vsyncpa [#allocation4 + $0x1], 1 }
  0x4b   :  { %323 = vsyncpa [#allocation7], 1 }
  0x4c   :  { %325 = vsyncpa [#allocation7 + $0x1], 1 }
  0x4d   :  { %326 = vsyncpa [#allocation5], 1 }
  0x4e   :  { %328 = vsyncpa [#allocation5 + $0x1], 1 }

</bundles_post_ra>
